<compile_context>
chip_gen: v6e
topology: v6e:2x2x1
jax: 0.10.0
libtpu: 0.0.40
codegen_flags: <defaults>
</compile_context>

<pallas_src>
import functools

import jax
import jax.numpy as jnp
from jax.experimental import pallas as pl
from jax.experimental.pallas import tpu as pltpu

_LANES = 128
_MAX_STEP_BYTES = 6 * 1024 * 1024   # target input bytes per grid step
_EPS = 1e-05


def _round_up(x, m):
    return ((x + m - 1) // m) * m


def _loss_ce_kernel(pred_ref, labels_ref, out_ref, *, tile_rows, width,
                    last_valid_rows, last_partial):
    """One (batch, row-tile) grid step.

    pred_ref:   (1, 2, tile_rows, width)
    labels_ref: (1, tile_rows, width)
    out_ref:    (1, 1, 8, width)   per-tile partial sums
    """
    x0 = pred_ref[0, 0].astype(jnp.float32)       # (tile_rows, width)
    x1 = pred_ref[0, 1].astype(jnp.float32)
    lab = labels_ref[0].astype(jnp.float32)

    logp0 = jnp.log(jnp.clip(x0, _EPS, 1.0 - _EPS))
    logp1 = jnp.log(jnp.clip(x1, _EPS, 1.0 - _EPS))

    # -(lab*logp0 + (1-lab)*logp1) == -(logp1 + lab*(logp0 - logp1))
    term = -(logp1 + lab * (logp0 - logp1))

    def _reduce(v):
        # Reduce only along row groups of 8 (vector adds, no cross-lane XLU);
        # the lane reduction happens in the wrapper.
        return jnp.sum(v.reshape(tile_rows // 8, 8, width), axis=0)

    if not last_partial:
        out_ref[0, 0] = _reduce(term)
    else:
        is_last = pl.program_id(1) == pl.num_programs(1) - 1

        @pl.when(jnp.logical_not(is_last))
        def _():
            out_ref[0, 0] = _reduce(term)

        @pl.when(is_last)
        def _():
            # Rows beyond the array edge hold undefined data read by the
            # boundary block; clip keeps log finite and the select discards
            # any garbage/NaN contribution.
            row = jax.lax.broadcasted_iota(jnp.int32, (tile_rows, width), 0)
            masked = jnp.where(row < last_valid_rows, term, 0.0)
            out_ref[0, 0] = _reduce(masked)


def loss_ce_T_forward(pred, labels):
    """pred: [B, 2, H, W]; labels: [B, H, W]. Returns scalar f32 loss."""
    B, C, H, W = pred.shape
    assert C == 2, "loss_ce_T expects exactly two channels"
    assert labels.shape == (B, H, W)
    n = H * W

    # Zero-copy layout selection (no jnp.pad, no extra HBM pass).
    if n % _LANES == 0:
        R, Wd = n // _LANES, _LANES                 # lane-dense view
        pred_in = pred.reshape(B, 2, R, Wd)
        labels_in = labels.reshape(B, R, Wd)
    else:
        R, Wd = H, W                                # native layout, W = full dim
        pred_in = pred
        labels_in = labels

    # Sublane multiple depends on the narrowest input dtype (f32->8, bf16->16,
    # int8->32); tile_rows is always a multiple of 8 for the in-kernel reshape.
    min_bytes = min(pred.dtype.itemsize, labels.dtype.itemsize)
    row_mult = max(8, 32 // max(1, min_bytes))

    bytes_per_row = Wd * (2 * pred.dtype.itemsize + labels.dtype.itemsize)
    max_rows = max(row_mult,
                   (_MAX_STEP_BYTES // max(1, bytes_per_row))
                   // row_mult * row_mult)
    tile_rows = min(max_rows, _round_up(R, row_mult))

    n_tiles = pl.cdiv(R, tile_rows)
    last_valid_rows = R - (n_tiles - 1) * tile_rows
    last_partial = last_valid_rows != tile_rows

    step_bytes = tile_rows * bytes_per_row
    vmem_limit = min(48 * 1024 * 1024,
                     max(16 * 1024 * 1024, 3 * step_bytes))

    kernel = functools.partial(
        _loss_ce_kernel,
        tile_rows=tile_rows,
        width=Wd,
        last_valid_rows=last_valid_rows,
        last_partial=last_partial,
    )

    partials = pl.pallas_call(
        kernel,
        out_shape=jax.ShapeDtypeStruct((B, n_tiles, 8, Wd), jnp.float32),
        grid_spec=pltpu.PrefetchScalarGridSpec(
            num_scalar_prefetch=0,
            grid=(B, n_tiles),
            in_specs=[
                pl.BlockSpec((1, 2, tile_rows, Wd),
                             lambda b, t: (b, 0, t, 0)),
                pl.BlockSpec((1, tile_rows, Wd),
                             lambda b, t: (b, t, 0)),
            ],
            out_specs=pl.BlockSpec((1, 1, 8, Wd),
                                   lambda b, t: (b, t, 0, 0)),
        ),
        compiler_params=pltpu.CompilerParams(
            dimension_semantics=("parallel", "parallel"),
            vmem_limit_bytes=vmem_limit,
        ),
    )(pred_in, labels_in)

    # Mean over the broadcasted elementwise result shape [B, H, W].
    return jnp.sum(partials) / jnp.float32(B * n)


def _reference(pred, labels):
    p = jnp.clip(pred.astype(jnp.float32), _EPS, 1.0 - _EPS)
    return jnp.mean(-1.0 * (labels * jnp.log(p[:, 0]) +
                            (1.0 - labels) * jnp.log(p[:, 1])))


if __name__ == "__main__":
    key = jax.random.PRNGKey(0)
    k1, k2 = jax.random.split(key, 2)

    B, C, H, W = 2, 2, 16, 16
    # pred carries per-pixel class probabilities (the module clamps them
    # directly; there is no softmax in loss_ce_T).
    pred = jax.random.uniform(k1, (B, C, H, W), dtype=jnp.float32)
    labels = (jax.random.uniform(k2, (B, H, W)) > 0.5).astype(jnp.float32)

    out = loss_ce_T_forward(pred, labels)
    out = jax.block_until_ready(out)

    ref = _reference(pred, labels)
    assert jnp.allclose(out, ref, rtol=1e-5, atol=1e-6), (out, ref)
    print("KERNEL_OK")
</pallas_src>

<mosaic_0001>
module attributes {stable_mosaic.version = 11 : i64} {
  func.func @_loss_ce_kernel(%arg0: i32, %arg1: i32, %arg2: memref<1x2x8x128xf32, #tpu.memory_space<vmem>>, %arg3: memref<1x8x128xf32, #tpu.memory_space<vmem>>, %arg4: memref<1x1x8x128xf32, #tpu.memory_space<vmem>>) attributes {dimension_semantics = [#tpu.dimension_semantics<parallel>, #tpu.dimension_semantics<parallel>], iteration_bounds = array<i64: 2, 1>, scalar_prefetch = 0 : i64, scratch_operands = 0 : i64, tpu.core_type = #tpu.core_type<tc>, window_params = [{transform_indices = @transform_0, window_bounds = array<i64: 1, 2, 8, 128>}, {transform_indices = @transform_1, window_bounds = array<i64: 1, 8, 128>}, {transform_indices = @transform_2, window_bounds = array<i64: 1, 1, 8, 128>}]} {
    %c0 = arith.constant 0 : index
    %c0_0 = arith.constant 0 : index
    %c0_1 = arith.constant 0 : index
    %c0_2 = arith.constant 0 : index
    %0 = vector.load %arg2[%c0, %c0_0, %c0_1, %c0_2] : memref<1x2x8x128xf32, #tpu.memory_space<vmem>>, vector<1x1x8x128xf32>
    %1 = vector.shape_cast %0 : vector<1x1x8x128xf32> to vector<8x128xf32>
    %c0_3 = arith.constant 0 : index
    %c1 = arith.constant 1 : index
    %c0_4 = arith.constant 0 : index
    %c0_5 = arith.constant 0 : index
    %2 = vector.load %arg2[%c0_3, %c1, %c0_4, %c0_5] : memref<1x2x8x128xf32, #tpu.memory_space<vmem>>, vector<1x1x8x128xf32>
    %3 = vector.shape_cast %2 : vector<1x1x8x128xf32> to vector<8x128xf32>
    %c0_6 = arith.constant 0 : index
    %c0_7 = arith.constant 0 : index
    %c0_8 = arith.constant 0 : index
    %4 = vector.load %arg3[%c0_6, %c0_7, %c0_8] : memref<1x8x128xf32, #tpu.memory_space<vmem>>, vector<1x8x128xf32>
    %5 = vector.shape_cast %4 : vector<1x8x128xf32> to vector<8x128xf32>
    %cst = arith.constant 9.99999974E-6 : f32
    %cst_9 = arith.constant 0.999989986 : f32
    %6 = vector.broadcast %cst : f32 to vector<8x128xf32>
    %7 = arith.maximumf %6, %1 : vector<8x128xf32>
    %8 = vector.broadcast %cst_9 : f32 to vector<8x128xf32>
    %9 = arith.minimumf %8, %7 : vector<8x128xf32>
    %10 = math.log %9 : vector<8x128xf32>
    %cst_10 = arith.constant 9.99999974E-6 : f32
    %cst_11 = arith.constant 0.999989986 : f32
    %11 = vector.broadcast %cst_10 : f32 to vector<8x128xf32>
    %12 = arith.maximumf %11, %3 : vector<8x128xf32>
    %13 = vector.broadcast %cst_11 : f32 to vector<8x128xf32>
    %14 = arith.minimumf %13, %12 : vector<8x128xf32>
    %15 = math.log %14 : vector<8x128xf32>
    %16 = arith.subf %10, %15 : vector<8x128xf32>
    %17 = arith.mulf %5, %16 : vector<8x128xf32>
    %18 = arith.addf %15, %17 : vector<8x128xf32>
    %cst_12 = arith.constant 0.000000e+00 : f32
    %19 = vector.broadcast %cst_12 : f32 to vector<8x128xf32>
    %20 = arith.subf %19, %18 : vector<8x128xf32>
    %c0_i32 = arith.constant 0 : i32
    %21 = arith.cmpi eq, %arg1, %c0_i32 : i32
    %true = arith.constant true
    %22 = arith.xori %21, %true : i1
    %23 = arith.extui %22 : i1 to i32
    %c0_i32_13 = arith.constant 0 : i32
    %24 = arith.cmpi ne, %23, %c0_i32_13 : i32
    scf.if %24 {
      %27 = vector.shape_cast %20 : vector<8x128xf32> to vector<1x8x128xf32>
      %cst_15 = arith.constant dense<0.000000e+00> : vector<8x128xf32>
      %28 = vector.multi_reduction <add>, %27, %cst_15 [0] : vector<1x8x128xf32> to vector<8x128xf32>
      %c0_16 = arith.constant 0 : index
      %c0_17 = arith.constant 0 : index
      %c0_18 = arith.constant 0 : index
      %c0_19 = arith.constant 0 : index
      %29 = vector.load %arg4[%c0_16, %c0_17, %c0_18, %c0_19] : memref<1x1x8x128xf32, #tpu.memory_space<vmem>>, vector<1x1x8x128xf32>
      %30 = vector.shape_cast %29 : vector<1x1x8x128xf32> to vector<8x128xf32>
      %31 = vector.shape_cast %28 : vector<8x128xf32> to vector<1x1x8x128xf32>
      tpu.vector_store %arg4[%c0_16, %c0_17, %c0_18, %c0_19], %31 {strides = array<i32>} : memref<1x1x8x128xf32, #tpu.memory_space<vmem>>, vector<1x1x8x128xf32>,
    } else {
    }
    %25 = arith.extui %21 : i1 to i32
    %c0_i32_14 = arith.constant 0 : i32
    %26 = arith.cmpi ne, %25, %c0_i32_14 : i32
    scf.if %26 {
      %27 = tpu.iota {dimensions = array<i32: 0>} : vector<8x128xi32>
      %c2_i32 = arith.constant 2 : i32
      %28 = vector.broadcast %c2_i32 : i32 to vector<8x128xi32>
      %29 = arith.cmpi slt, %27, %28 : vector<8x128xi32>
      %cst_15 = arith.constant 0.000000e+00 : f32
      %30 = vector.broadcast %cst_15 : f32 to vector<8x128xf32>
      %31 = arith.select %29, %20, %30 : vector<8x128xi1>, vector<8x128xf32>
      %32 = vector.shape_cast %31 : vector<8x128xf32> to vector<1x8x128xf32>
      %cst_16 = arith.constant dense<0.000000e+00> : vector<8x128xf32>
      %33 = vector.multi_reduction <add>, %32, %cst_16 [0] : vector<1x8x128xf32> to vector<8x128xf32>
      %c0_17 = arith.constant 0 : index
      %c0_18 = arith.constant 0 : index
      %c0_19 = arith.constant 0 : index
      %c0_20 = arith.constant 0 : index
      %34 = vector.load %arg4[%c0_17, %c0_18, %c0_19, %c0_20] : memref<1x1x8x128xf32, #tpu.memory_space<vmem>>, vector<1x1x8x128xf32>
      %35 = vector.shape_cast %34 : vector<1x1x8x128xf32> to vector<8x128xf32>
      %36 = vector.shape_cast %33 : vector<8x128xf32> to vector<1x1x8x128xf32>
      tpu.vector_store %arg4[%c0_17, %c0_18, %c0_19, %c0_20], %36 {strides = array<i32>} : memref<1x1x8x128xf32, #tpu.memory_space<vmem>>, vector<1x1x8x128xf32>,
    } else {
    }
    return
  }
  func.func @transform_0(%arg0: i32, %arg1: i32) -> (i32, i32, i32, i32) {
    %c0_i32 = arith.constant 0 : i32
    %c0_i32_0 = arith.constant 0 : i32
    %c0_i32_1 = arith.constant 0 : i32
    return %arg0, %c0_i32, %arg1, %c0_i32_0 : i32, i32, i32, i32
  }
  func.func @transform_1(%arg0: i32, %arg1: i32) -> (i32, i32, i32) {
    %c0_i32 = arith.constant 0 : i32
    %c0_i32_0 = arith.constant 0 : i32
    return %arg0, %arg1, %c0_i32 : i32, i32, i32
  }
  func.func @transform_2(%arg0: i32, %arg1: i32) -> (i32, i32, i32, i32) {
    %c0_i32 = arith.constant 0 : i32
    %c0_i32_0 = arith.constant 0 : i32
    %c0_i32_1 = arith.constant 0 : i32
    return %arg0, %arg1, %c0_i32, %c0_i32_0 : i32, i32, i32, i32
  }
}

</mosaic_0001>

<bundles_post_ra>
// kernel: tpu_custom_call.1
= control target key start
LH: loop header
LB: loop body
LE: loop exit
PB: predicated region body
PF: predicated region fallthrough
CT: control target
= control target key end

     0   :  { %7 = vsyncpa [#allocation3], 0  ;;  %s780_s0 = inlined_call_operand.hbm [shape: f32[2,2,2,128], index: 0, kind: input, shape index: {}]   ;;  %s781_s1 = inlined_call_operand.hbm [shape: f32[2,2,128], index: 1, kind: input, shape index: {}]   ;;  %s782_s2 = inlined_call_operand.hbm [shape: f32[2,1,8,128], index: 2, kind: output, shape index: {}]  }
   0x1   :  { %9 = vsyncpa [#allocation3 + $0x1], 0 }
   0x2   :  { %10 = vsyncpa [#allocation6], 0 }
   0x3   :  { %12 = vsyncpa [#allocation6 + $0x1], 0 }
   0x4   :  { %13 = vsyncpa [#allocation4], 0 }
   0x5   :  { %15 = vsyncpa [#allocation4 + $0x1], 0  ;;  %s638_s9 = smov 0   ;;  %s640_s10 = smov 0  }
   0x6   :  { %s642_s11 = smov 0   ;;  %s644_s12 = smov 0  }
   0x7   :  { %s646_s13 = smov 0   ;;  %s648_s14 = smov 0  }
   0x8 LB: > { %s417_s15 = sadd.s32 4294967295, %s612_s14   ;;  %s418_s16 = sadd.s32 4294967294, %s612_s14   ;;  %s612_s14 = sphi %s648_s14, %s21_s14   ;;  %s608_s13 = sphi %s646_s13, %s793_s13   ;;  %s604_s12 = sphi %s644_s12, %s792_s12   ;;  %s600_s11 = sphi %s642_s11, %s791_s11   ;;  %s596_s10 = sphi %s640_s10, %s790_s10   ;;  %s592_s9 = sphi %s638_s9, %s789_s9  }
   0x9   : > { %s33_s17 = sadd.s32 1, %s608_s13  ;;  %s42_s18 = sadd.s32 1, %s600_s11 }
   0xa   : > { %p35_p0 = scmp.ge.s32.totalorder %s33_s17, 2  ;;  %p49_p1 = scmp.ne.s32.totalorder %s600_s11, %s596_s10 }
   0xb   : > { %p50_p2 = scmp.eq.s32.totalorder %s612_s14, 0  ;;  %p55_p3 = scmp.ne.s32.totalorder %s596_s10, %s592_s9 }
   0xc   : > { %s795_s17 = smov (%p35_p0, %s33_s17), 0  ;;  %p56_p5 = scmp.eq.s32.totalorder %s417_s15, 0 }
   0xd   : > { %p679_p4 = por %p50_p2, %p49_p1  ;;  %s37_s20 = ssub.s32 %s608_s13, %s795_s17 }
   0xe   : > { %p109_p6 = scmp.eq.s32.totalorder %s417_s15, 1  ;;  %p40_p7 = scmp.eq.s32.totalorder %s37_s20, 0 }
   0xf   : > { %p685_p8 = por %p56_p5, %p55_p3  ;;  %p115_p10 = scmp.eq.s32.totalorder %s418_s16, 1 }
  0x10   : > { %p689_p9 = por %p109_p6, %p49_p1  ;;  %p783_p12 = scmp.ge.s32.totalorder %s612_s14, 2 }
  0x11   : > { %s694_s23 = scalar_select %p40_p7, %s600_s11, %s42_s18  }
  0x12   : > { %p696_p11 = por %p115_p10, %p55_p3  ;;  %131 = sbr.rel (%p783_p12) target bundleno = 60 (0x3c), region = 16 }
  0x17   : > { %134 = sbr.rel (!%p679_p4) target bundleno = 41 (0x29), region = 20 }
  0x1c   : > { %s135_s25 = sand.u32 1, %s600_s11  }
  0x1d   : > { %s421_s26 = sshll.u32 %s135_s25, 4  ;;  %s136_s27 = scalar_lea.sflag [#allocation3], %s135_s25 }
  0x1e   : > { %s139_s28 = scalar_lea.vmem [#allocation2], %s421_s26 }
  0x1f   : > { %145 = vsyncadd %s136_s27, 192  ;;  %s437_s29 = sshll.u32 %s608_s13, 6  ;;  %s157_s30 = sld [smem:[#allocation0]]  }
  0x20   : > { %s150_s5 = scalar_lea.hbm %s780_s0, %s437_s29  ;;  %s165_s6 = sshll.u32 %s139_s28, 4  ;;  %s166_s6 = int_to_ptr.vmem [resolvable:$true] %s165_s6 }
  0x21   : > { %s614_s7 = smov 32   ;;  %s615_s8 = smov 128  }
  0x22   : > { %172 = sst [smem:[#allocation9]] %s614_s7  ;;  %s616_s15 = smov 1  }
  0x23   : > { %174 = sst [smem:[#allocation9 + $0x1]] %s615_s8  ;;  %s617_s20 = smov 2  }
  0x24   : > { %176 = sst [smem:[#allocation9 + $0x2]] %s616_s15  ;;  %s618_s25 = smov 131072  }
  0x25   : > { %s424_s16 = sshll.u32 %s157_s30, 26  ;;  %178 = sst [smem:[#allocation9 + $0x3]] %s614_s7 }
  0x26   : > { %s425_s18 = sadd.s32 134217728, %s424_s16  ;;  %180 = sst [smem:[#allocation9 + $0x4]] %s614_s7 }
  0x27   : > { %182 = sst [smem:[#allocation9 + $0x5]] %s617_s20 }
  0x28   : > { %184 = dma.general %s150_s5, 64, %s166_s6, %s136_s27, %s618_s25, [#allocation9], %s425_s18, 0  }
  0x29 PF: > { %187 = sbr.rel (!%p679_p4) target bundleno = 60 (0x3c), region = 24  ;;  %s188_s26 = sand.u32 (%p679_p4), 1, %s600_s11  }
  0x2a   : > { %s426_s28 = sshll.u32 (%p679_p4), %s188_s26, 3  ;;  %s189_s29 = scalar_lea.sflag (%p679_p4), [#allocation6], %s188_s26 }
  0x2b   : > { %s192_s3 = scalar_lea.vmem (%p679_p4), [#allocation5], %s426_s28 }
  0x2e   : > { %198 = vsyncadd %s189_s29, 96  ;;  %s427_s4 = sshll.u32 %s608_s13, 5  ;;  %s204_s30 = sshll.u32 %s192_s3, 4  ;;  %s205_s30 = int_to_ptr.vmem [resolvable:$true] %s204_s30 }
  0x2f   : > { %s202_s7 = scalar_lea.hbm %s781_s1, %s427_s4  ;;  %s516_s16 = scalar_lea.vmem %s205_s30, 32 }
  0x30   : > { %p517_p13 = scmp.ne.s32.totalorder %s205_s30, %s516_s16  ;;  %s619_s27 = smov [#allocation5]  }
  0x31   : > { %s518_s5 = sshll.u32 %s619_s27, 4  ;;  %s519_s5 = int_to_ptr.vmem [resolvable:$false] %s518_s5 }
  0x32   : > { %s520_s19 = scalar_lea.vmem %s519_s5, 256  ;;  %p521_p0 = scmp.lt.s32.totalorder %s205_s30, %s519_s5 }
  0x33   : > { %p522_p1 = scmp.lt.s32.totalorder %s520_s19, %s516_s16 }
  0x35   : > { %p523_p2 = por %p522_p1, %p521_p0 }
  0x37   : > { %p524_p3 = pnand %p523_p2, %p517_p13 }
  0x39   : > { %527 = shalt.err (!%p524_p3)
}
  0x3a   : > { %s620_s6 = smov 32   ;;  %s621_s18 = smov 2  }
  0x3b   : > { %210 = dma.hbm_to_vmem [thread:$0]  %s202_s7, 32, %s205_s30, %s189_s29, %s620_s6, %s620_s6, %s621_s18  }
  0x3c PF: > { %p428_p4 = scmp.ge.s32.totalorder %s612_s14, 1  ;;  %p212_p5 = scmp.lt.s32.totalorder %s612_s14, 3 }
  0x3e   : > { %p213_p6 = pnand %p428_p4, %p212_p5 }
  0x3f   : > { %s720_s20 = sand.u32 (!%p213_p6), 1, %s596_s10  }
  0x40   : > { %216 = sbr.rel (%p213_p6) target bundleno = 117 (0x75), region = 28  ;;  %s429_s25 = sshll.u32 (!%p213_p6), %s720_s20, 4 }
  0x41   : > { %s219_s26 = scalar_lea.sflag (!%p213_p6), [#allocation3], %s720_s20  ;;  %s222_s28 = scalar_lea.vmem (!%p213_p6), [#allocation2], %s429_s25 }
  0x45   : > { %579 = dma.done.wait (%p685_p8), %s219_s26, 256  }
  0x46   : > { %581 = vsyncadd (%p685_p8), %s219_s26, 4294967040  ;;  %s430_s29 = sshll.u32 %s720_s20, 3  ;;  %s228_s3 = scalar_lea.sflag [#allocation6], %s720_s20 }
  0x47   : > { %s231_s4 = scalar_lea.vmem [#allocation5], %s430_s29 }
  0x48   : > { %583 = dma.done.wait (%p685_p8), %s228_s3, 128  }
  0x49   : > { %585 = vsyncadd (%p685_p8), %s228_s3, 4294967168  ;;  %v263_v0 = vld [vmem:[%s222_s28] sm:$0xff]  ;;  %v432_v1 = vld [vmem:[%s222_s28 + $0x8] sm:$0xff]  ;;  %v289_v9 = vlaneseq  ;;  %s256_s21 = scalar_lea.vmem [#allocation7], %s430_s29  ;;  %s434_s8 = sshll.u32 %s604_s12, 7 }
  0x4a   : > { %v267_v2 = vmax.f32 %v263_v0, 1e-05  ;;  %v271_v3 = vmax.f32 %v432_v1, 1e-05  ;;  %v266_v11 = vld [vmem:[%s231_s4] sm:$0xff]  ;;  %s310_s30 = sshll.u32 %s256_s21, 4  ;;  %s308_s16 = scalar_lea.hbm %s782_s2, %s434_s8  ;;  %s735_s30 = int_to_ptr.vmem [resolvable:$true] %s310_s30 }
  0x4b   : > { %v290_v13 = vshrl.u32 %v289_v9, 7  ;;  %s296_s27 = scalar_lea.sflag [#allocation4], %s720_s20  ;;  %s528_s5 = scalar_lea.vmem %s735_s30, 128 }
  0x4c   : > { %v268_v4 = vmin.f32 %v267_v2, 0.99999  ;;  %v272_v5 = vmin.f32 %v271_v3, 0.99999  ;;  %p529_p7 = scmp.ne.s32.totalorder %s735_s30, %s528_s5  ;;  %s622_s12 = smov [#allocation7]  }
  0x4d   : > { %vm291_vm0 = vcmp.lt.s32.totalorder %v290_v13, 2  ;;  %s532_s19 = sshll.u32 %s622_s12, 4  ;;  %s533_s19 = int_to_ptr.vmem [resolvable:$false] %s532_s19 }
  0x4e   : > { %502 = vlog2.f32 %v268_v4  ;;  %p530_p8 = pnand %p529_p7, %p689_p9  ;;  %s534_s6 = scalar_lea.vmem %s533_s19, 256 }
  0x4f   : > { %504 = vlog2.f32 %v272_v5  ;;  %p535_p13 = scmp.lt.s32.totalorder %s735_s30, %s533_s19  ;;  %p536_p0 = scmp.lt.s32.totalorder %s534_s6, %s528_s5 }
  0x50   : > { %p531_p10 = pneg %p530_p8 }
  0x51   : > { %p537_p1 = por %p536_p0, %p535_p13 }
  0x53   : > { %p538_p2 = pnand %p537_p1, %p531_p10 }
  0x5b   : > { %v503_v6 = vpop.eup %502 }
  0x5c   : > { %v505_v7 = vpop.eup %504  ;;  %v270_v8 = vmul.f32 0.6931472, %v503_v6 }
  0x5d   : > { %v274_v10 = vmul.f32 0.6931472, %v505_v7 }
  0x5f   : > { %v275_v12 = vsub.f32 %v270_v8, %v274_v10 }
  0x61   : > { %v276_v14 = vmul.f32 %v275_v12, %v266_v11 }
  0x63   : > { %v277_v15 = vadd.f32 %v276_v14, %v274_v10 }
  0x65   : > { %v278_v16 = vsub.f32 0.0, %v277_v15 }
  0x67   : > { %v292_v17 = vsel %vm291_vm0, %v278_v16, 0.0 }
  0x68   : > { %294 = vst [vmem:[%s256_s21] sm:$0xff] %v292_v17 }
  0x69   : > { %541 = shalt.err (!%p538_p2)
}
  0x6a   : > { %s542_s18 = scalar_lea.hbm %s308_s16, 128  ;;  %s546_s26 = scalar_lea.hbm %s782_s2, 256 }
  0x6b   : > { %p543_p3 = scmp.ne.s32.totalorder %s308_s16, %s542_s18  ;;  %p547_p6 = scmp.lt.s32.totalorder %s308_s16, %s782_s2 }
  0x6c   : > { %p548_p7 = scmp.lt.s32.totalorder %s546_s26, %s542_s18 }
  0x6d   : > { %p544_p4 = pnand %p543_p3, %p689_p9 }
  0x6e   : > { %p549_p8 = por %p548_p7, %p547_p6 }
  0x6f   : > { %p545_p5 = pneg %p544_p4 }
  0x71   : > { %p550_p12 = pnand %p549_p8, %p545_p5 }
  0x73   : > { %553 = shalt.err (!%p550_p12)
}
  0x74   : > { %440 = dma.vmem_to_hbm [thread:$0]  (%p689_p9), %s735_s30, 128, %s308_s16, %s296_s27  }
  0x75 PF: > { %s322_s3 = sand.u32 1, %s592_s9   ;;  %p788_p10 = scmp.ge.s32.totalorder %s612_s14, 2 }
  0x76   : > { %s323_s4 = scalar_lea.sflag [#allocation4], %s322_s3 }
  0x77   : > { %p443_p13 = pnand %p788_p10, %p696_p11 }
  0x79   : > { %p444_p0 = pneg %p443_p13 }
  0x7b   : > { %587 = dma.done.wait (%p444_p0), %s323_s4, 128  }
  0x7c   : > { %589 = vsyncadd (%p444_p0), %s323_s4, 4294967168  ;;  %s21_s14 = sadd.s32 1, %s612_s14   ;;  %s789_s9 = smov %s596_s10 }
  0x7d   : > { %p18_p1 = scmp.ge.s32.totalorder %s21_s14, 4   ;;  %s790_s10 = smov %s600_s11 }
  0x7e   : > { %s791_s11 = smov %s694_s23  ;;  %s792_s12 = smov %s608_s13 }
  0x7f   : > { %s793_s13 = smov %s795_s17  ;;  %20 = sbr.rel (!%p18_p1) target bundleno = 8 (0x8), region = 100 }
  0x84   :  { %328 = vsyncpa [#allocation3], 1 }
  0x85   :  { %330 = vsyncpa [#allocation3 + $0x1], 1 }
  0x86   :  { %331 = vsyncpa [#allocation6], 1 }
  0x87   :  { %333 = vsyncpa [#allocation6 + $0x1], 1 }
  0x88   :  { %334 = vsyncpa [#allocation4], 1 }
  0x89   :  { %336 = vsyncpa [#allocation4 + $0x1], 1 }

</bundles_post_ra>
